<compile_context>
chip_gen: v7x
topology: tpu7x:2x2x1
jax: 0.10.0
libtpu: 0.0.40
codegen_flags: <defaults>
</compile_context>

<pallas_src>
import jax
import jax.numpy as jnp
from jax import lax
from jax.experimental import pallas as pl
from jax.experimental.pallas import tpu as pltpu


# ---------------------------------------------------------------------------
# Generation-aware VMEM budgets
# ---------------------------------------------------------------------------
def _vmem_budget():
    """Returns (per-input-tile byte budget, vmem_limit_bytes)."""
    cap = 64 * 1024 * 1024                       # conservative default (v7x per-TC)
    try:
        cap = int(getattr(pltpu.get_tpu_info(), "vmem_capacity_bytes", cap)) or cap
    except Exception:
        pass
    vmem_limit = int(cap * 0.75)                 # ~96 MiB v5e/v6e, ~48 MiB v7x
    # Live footprint ~= 2x input buf + 2x output buf + small f32 temps.
    tile_budget = int(cap * 0.65) // 6           # ~14 MiB v5e/v6e, ~7 MiB v7x
    return tile_budget, vmem_limit


def _pick_row_tile(n_rows, channels, itemsize, budget, batch):
    """Rows-of-128-lanes per tile: multiple of 8 (or full extent), VMEM-sized."""
    bytes_per_row = channels * 128 * itemsize
    max_rows = max(1, budget // bytes_per_row)
    s = n_rows if max_rows >= n_rows else max(8, (max_rows // 8) * 8)
    # Keep >= 2 grid programs when possible so megacore parts use both TCs.
    if batch * pl.cdiv(n_rows, s) < 2 and n_rows > 8:
        s = max(8, (n_rows // 2) // 8 * 8)
    return s


def _pick_lane_tile(hw, channels, itemsize, budget, batch):
    """Lane tile (multiple of 128, or full extent), VMEM-sized."""
    max_lanes = max(128, budget // (channels * itemsize))
    t = hw if max_lanes >= hw else max(128, (max_lanes // 128) * 128)
    if batch * pl.cdiv(hw, t) < 2 and hw > 128:
        t = max(128, (hw // 2) // 128 * 128)
    return t


# ---------------------------------------------------------------------------
# Kernels
# ---------------------------------------------------------------------------
def _sa_kernel_rows(wb_ref, x_ref, o_ref):
    """Primary path.  x_ref/o_ref: (1, C, S, 128); wb_ref: SMEM (C+1,) f32
    holding [w_0 .. w_{C-1}, bias]."""
    C = x_ref.shape[1]
    # f32 channel accumulation: only one (S, 128) f32 slab live at a time,
    # no full-tile f32 copy of x.
    acc = jnp.full(x_ref.shape[2:], wb_ref[C], dtype=jnp.float32)
    if C <= 16:
        for c in range(C):                           # static unroll for small C
            acc = acc + x_ref[0, c].astype(jnp.float32) * wb_ref[c]
    else:
        def body(c, a):
            return a + x_ref[0, c].astype(jnp.float32) * wb_ref[c]
        acc = lax.fori_loop(0, C, body, acc)

    attn = jax.nn.sigmoid(acc)                       # (S, 128) f32
    x = x_ref[...]                                   # native dtype
    o_ref[...] = (x * attn.astype(x.dtype)[None, None]).astype(o_ref.dtype)


def _sa_kernel_flat(x_ref, w_ref, b_ref, o_ref):
    """Fallback when H*W is not a multiple of 128.  x_ref/o_ref: (1, C, T)."""
    x = x_ref[...]
    logits = jnp.sum(x.astype(jnp.float32) * w_ref[...], axis=1, keepdims=True)
    attn = jax.nn.sigmoid(logits + b_ref[...])       # (1, 1, T) f32
    o_ref[...] = (x * attn.astype(x.dtype)).astype(o_ref.dtype)


# ---------------------------------------------------------------------------
# Wrapper
# ---------------------------------------------------------------------------
def spatial_attention_forward(x_nchw, conv_weight, conv_bias):
    """x_nchw: (N, C, H, W); conv_weight: (1, C, 1, 1); conv_bias: (1,)."""
    N, C, H, W = x_nchw.shape
    HW = H * W
    itemsize = jnp.dtype(x_nchw.dtype).itemsize
    tile_budget, vmem_limit = _vmem_budget()
    cparams = pltpu.CompilerParams(
        dimension_semantics=("parallel", "parallel"),
        vmem_limit_bytes=vmem_limit,
    )

    if HW % 128 == 0:
        # Lane-dense layout: spatial -> (rows, 128).  Sublane axis = spatial
        # rows, so stores are unmasked full vregs regardless of C.
        R = HW // 128
        x4 = x_nchw.reshape(N, C, R, 128)            # free contiguous reshape
        wb = jnp.concatenate(
            [conv_weight.reshape(C), conv_bias.reshape(1)]).astype(jnp.float32)
        S = _pick_row_tile(R, C, itemsize, tile_budget, N)
        grid = (N, pl.cdiv(R, S))                    # ragged last tile OK

        out = pl.pallas_call(
            _sa_kernel_rows,
            out_shape=jax.ShapeDtypeStruct((N, C, R, 128), x_nchw.dtype),
            grid_spec=pltpu.PrefetchScalarGridSpec(
                num_scalar_prefetch=1,               # [w..., b] -> SMEM
                grid=grid,
                in_specs=[
                    pl.BlockSpec((1, C, S, 128), lambda n, t, _wb: (n, 0, t, 0)),
                ],
                out_specs=pl.BlockSpec((1, C, S, 128), lambda n, t, _wb: (n, 0, t, 0)),
            ),
            compiler_params=cparams,
        )(wb, x4)
        return out.reshape(N, C, H, W)

    # Fallback: spatial extent not a multiple of 128.  Keep (N, C, HW) and let
    # Pallas mask the ragged last lane tile via a cdiv grid.
    x2 = x_nchw.reshape(N, C, HW)
    w3 = conv_weight.reshape(1, C, 1).astype(jnp.float32)
    b3 = conv_bias.reshape(1, 1, 1).astype(jnp.float32)
    T = _pick_lane_tile(HW, C, itemsize, tile_budget, N)
    grid = (N, pl.cdiv(HW, T))

    out = pl.pallas_call(
        _sa_kernel_flat,
        out_shape=jax.ShapeDtypeStruct((N, C, HW), x_nchw.dtype),
        grid_spec=pltpu.PrefetchScalarGridSpec(
            num_scalar_prefetch=0,
            grid=grid,
            in_specs=[
                pl.BlockSpec((1, C, T), lambda n, t: (n, 0, t)),
                pl.BlockSpec((1, C, 1), lambda n, t: (0, 0, 0)),
                pl.BlockSpec((1, 1, 1), lambda n, t: (0, 0, 0)),
            ],
            out_specs=pl.BlockSpec((1, C, T), lambda n, t: (n, 0, t)),
        ),
        compiler_params=cparams,
    )(x2, w3, b3)
    return out.reshape(N, C, H, W)


# ---------------------------------------------------------------------------
# Pure-JAX reference (mirrors the PyTorch forward)
# ---------------------------------------------------------------------------
def reference_forward(x, conv_weight, conv_bias):
    attn = lax.conv_general_dilated(
        x, conv_weight, window_strides=(1, 1), padding="VALID",
        dimension_numbers=("NCHW", "OIHW", "NCHW"))
    attn = attn + conv_bias[None, :, None, None]
    attn = jax.nn.sigmoid(attn)
    return x * attn


# ---------------------------------------------------------------------------
if __name__ == "__main__":
    N, C, H, W = 2, 4, 16, 16

    key = jax.random.PRNGKey(0)
    k1, k2, k3 = jax.random.split(key, 3)

    x = jax.random.normal(k1, (N, C, H, W), jnp.float32)
    conv_weight = jax.random.normal(k2, (1, C, 1, 1), jnp.float32) * 0.5
    conv_bias = jax.random.normal(k3, (1,), jnp.float32) * 0.1

    fwd = jax.jit(spatial_attention_forward)
    out = fwd(x, conv_weight, conv_bias)
    out = jax.block_until_ready(out)

    ref = reference_forward(x, conv_weight, conv_bias)
    ref = jax.block_until_ready(ref)

    assert out.shape == (N, C, H, W)
    assert jnp.allclose(out, ref, atol=1e-4, rtol=1e-4), (
        float(jnp.max(jnp.abs(out - ref))))

    print("KERNEL_OK")
</pallas_src>

<mosaic_0001>
module attributes {stable_mosaic.version = 11 : i64} {
  func.func @_sa_kernel_rows(%arg0: i32, %arg1: i32, %arg2: memref<5xf32, #tpu.memory_space<smem>>, %arg3: memref<1x4x2x128xf32, #tpu.memory_space<vmem>>, %arg4: memref<1x4x2x128xf32, #tpu.memory_space<vmem>>) attributes {dimension_semantics = [#tpu.dimension_semantics<parallel>, #tpu.dimension_semantics<parallel>], iteration_bounds = array<i64: 2, 1>, scalar_prefetch = 1 : i64, scratch_operands = 0 : i64, tpu.core_type = #tpu.core_type<tc>, window_params = [{transform_indices = @transform_0, window_bounds = array<i64: 1, 4, 2, 128>}, {transform_indices = @transform_1, window_bounds = array<i64: 1, 4, 2, 128>}]} {
    %c4 = arith.constant 4 : index
    %0 = memref.load %arg2[%c4] : memref<5xf32, #tpu.memory_space<smem>>
    %1 = vector.broadcast %0 : f32 to vector<2x128xf32>
    %c0 = arith.constant 0 : index
    %c0_0 = arith.constant 0 : index
    %c0_1 = arith.constant 0 : index
    %c0_2 = arith.constant 0 : index
    %2 = vector.load %arg3[%c0, %c0_0, %c0_1, %c0_2] : memref<1x4x2x128xf32, #tpu.memory_space<vmem>>, vector<1x1x2x128xf32>
    %3 = vector.shape_cast %2 : vector<1x1x2x128xf32> to vector<2x128xf32>
    %c0_3 = arith.constant 0 : index
    %4 = memref.load %arg2[%c0_3] : memref<5xf32, #tpu.memory_space<smem>>
    %5 = vector.broadcast %4 : f32 to vector<2x128xf32>
    %6 = arith.mulf %3, %5 : vector<2x128xf32>
    %7 = arith.addf %1, %6 : vector<2x128xf32>
    %c0_4 = arith.constant 0 : index
    %c1 = arith.constant 1 : index
    %c0_5 = arith.constant 0 : index
    %c0_6 = arith.constant 0 : index
    %8 = vector.load %arg3[%c0_4, %c1, %c0_5, %c0_6] : memref<1x4x2x128xf32, #tpu.memory_space<vmem>>, vector<1x1x2x128xf32>
    %9 = vector.shape_cast %8 : vector<1x1x2x128xf32> to vector<2x128xf32>
    %c1_7 = arith.constant 1 : index
    %10 = memref.load %arg2[%c1_7] : memref<5xf32, #tpu.memory_space<smem>>
    %11 = vector.broadcast %10 : f32 to vector<2x128xf32>
    %12 = arith.mulf %9, %11 : vector<2x128xf32>
    %13 = arith.addf %7, %12 : vector<2x128xf32>
    %c0_8 = arith.constant 0 : index
    %c2 = arith.constant 2 : index
    %c0_9 = arith.constant 0 : index
    %c0_10 = arith.constant 0 : index
    %14 = vector.load %arg3[%c0_8, %c2, %c0_9, %c0_10] : memref<1x4x2x128xf32, #tpu.memory_space<vmem>>, vector<1x1x2x128xf32>
    %15 = vector.shape_cast %14 : vector<1x1x2x128xf32> to vector<2x128xf32>
    %c2_11 = arith.constant 2 : index
    %16 = memref.load %arg2[%c2_11] : memref<5xf32, #tpu.memory_space<smem>>
    %17 = vector.broadcast %16 : f32 to vector<2x128xf32>
    %18 = arith.mulf %15, %17 : vector<2x128xf32>
    %19 = arith.addf %13, %18 : vector<2x128xf32>
    %c0_12 = arith.constant 0 : index
    %c3 = arith.constant 3 : index
    %c0_13 = arith.constant 0 : index
    %c0_14 = arith.constant 0 : index
    %20 = vector.load %arg3[%c0_12, %c3, %c0_13, %c0_14] : memref<1x4x2x128xf32, #tpu.memory_space<vmem>>, vector<1x1x2x128xf32>
    %21 = vector.shape_cast %20 : vector<1x1x2x128xf32> to vector<2x128xf32>
    %c3_15 = arith.constant 3 : index
    %22 = memref.load %arg2[%c3_15] : memref<5xf32, #tpu.memory_space<smem>>
    %23 = vector.broadcast %22 : f32 to vector<2x128xf32>
    %24 = arith.mulf %21, %23 : vector<2x128xf32>
    %25 = arith.addf %19, %24 : vector<2x128xf32>
    %26 = arith.negf %25 : vector<2x128xf32>
    %27 = math.exp %26 : vector<2x128xf32>
    %cst = arith.constant 1.000000e+00 : f32
    %28 = vector.broadcast %cst : f32 to vector<2x128xf32>
    %29 = arith.addf %28, %27 : vector<2x128xf32>
    %30 = arith.divf %28, %29 : vector<2x128xf32>
    %c0_16 = arith.constant 0 : index
    %c0_17 = arith.constant 0 : index
    %c0_18 = arith.constant 0 : index
    %c0_19 = arith.constant 0 : index
    %31 = vector.load %arg3[%c0_16, %c0_17, %c0_18, %c0_19] : memref<1x4x2x128xf32, #tpu.memory_space<vmem>>, vector<1x4x2x128xf32>
    %32 = vector.shape_cast %30 : vector<2x128xf32> to vector<1x1x2x128xf32>
    %33 = vector.broadcast %32 : vector<1x1x2x128xf32> to vector<1x4x2x128xf32>
    %34 = arith.mulf %31, %33 : vector<1x4x2x128xf32>
    %c0_20 = arith.constant 0 : index
    %c0_21 = arith.constant 0 : index
    %c0_22 = arith.constant 0 : index
    %c0_23 = arith.constant 0 : index
    %35 = vector.load %arg4[%c0_20, %c0_21, %c0_22, %c0_23] : memref<1x4x2x128xf32, #tpu.memory_space<vmem>>, vector<1x4x2x128xf32>
    tpu.vector_store %arg4[%c0_20, %c0_21, %c0_22, %c0_23], %34 {strides = array<i32>} : memref<1x4x2x128xf32, #tpu.memory_space<vmem>>, vector<1x4x2x128xf32>,
    return
  }
  func.func @transform_0(%arg0: i32, %arg1: i32, %arg2: memref<5xf32, #tpu.memory_space<smem>>) -> (i32, i32, i32, i32) {
    %c0_i32 = arith.constant 0 : i32
    %c0_i32_0 = arith.constant 0 : i32
    %c0_i32_1 = arith.constant 0 : i32
    return %arg0, %c0_i32, %arg1, %c0_i32_0 : i32, i32, i32, i32
  }
  func.func @transform_1(%arg0: i32, %arg1: i32, %arg2: memref<5xf32, #tpu.memory_space<smem>>) -> (i32, i32, i32, i32) {
    %c0_i32 = arith.constant 0 : i32
    %c0_i32_0 = arith.constant 0 : i32
    %c0_i32_1 = arith.constant 0 : i32
    return %arg0, %c0_i32, %arg1, %c0_i32_0 : i32, i32, i32, i32
  }
}

</mosaic_0001>

<bundles_post_ra>
// kernel: spatial_attention_forward.1
= control target key start
LH: loop header
LB: loop body
LE: loop exit
PB: predicated region body
PF: predicated region fallthrough
CT: control target
= control target key end

     0   :  { %s428_s0 = inlined_call_operand.vmem [shape: f32[5], index: 0, kind: input, shape index: {}]   ;;  %s429_s1 = inlined_call_operand.vmem [shape: f32[2,4,2,128], index: 1, kind: input, shape index: {}]   ;;  %s430_s2 = inlined_call_operand.vmem [shape: f32[2,4,2,128], index: 2, kind: output, shape index: {}]  }
   0x1   :  { %s7_s11 = sshll.u32 %s428_s0, 4  ;;  %s8_s11 = int_to_ptr.vmem [resolvable:$true] %s7_s11 }
   0x2   :  { %s331_s12 = scalar_lea.vmem %s8_s11, 16  ;;  %p336_p1 = scmp.lt.s32.totalorder %s8_s11, %s8_s11 }
   0x3   :  { %p332_p0 = scmp.ne.s32.totalorder %s8_s11, %s331_s12  ;;  %p337_p2 = scmp.lt.s32.totalorder %s331_s12, %s331_s12 }
   0x5   :  { %p338_p3 = por %p337_p2, %p336_p1 }
   0x7   :  { %p339_p4 = pnand %p338_p3, %p332_p0 }
   0x9   :  { %342 = shalt.err (!%p339_p4)  }
   0xa   :  { %s369_s13 = smov [#allocation3]  }
   0xb   :  { %10 = dma.vmem_to_smem %s8_s11, 16, %s369_s13, [#allocation2] }
   0xc   :  { %355 = dma.done.wait [#allocation2], 16 }
   0xd   :  { %356 = vsyncadd [#allocation2], 4294967280 }
   0xe   :  { %12 = sfence }
   0xf   :  { %s388_s14 = smov 0   ;;  %s390_s15 = smov 0  }
  0x10   :  { %s392_s16 = smov 0  }
  0x11 LB: > { %s30_s0 = sadd.s32 1, %s363_s15  ;;  %p285_p5 = scmp.ge.s32.totalorder %s367_s16, 1  ;;  %s367_s16 = sphi %s392_s16, %s18_s16   ;;  %s363_s15 = sphi %s390_s15, %s432_s15   ;;  %s359_s14 = sphi %s388_s14, %s431_s14  }
  0x12   : > { %p32_p6 = scmp.ge.s32.totalorder %s30_s0, 2  ;;  %p113_p7 = scmp.lt.s32.totalorder %s367_s16, 3 }
  0x14   : > { %s434_s0 = smov (%p32_p6, %s30_s0), 0  ;;  %p114_p8 = pnand %p285_p5, %p113_p7 }
  0x15   : > { %p139_p9 = scmp.lt.s32.totalorder (!%p114_p8), %s359_s14, 1  ;;  %s290_s17 = sld [smem:[#allocation3 + $0x4]] (!%p114_p8) }
  0x16   : > { %117 = sbr.rel (%p114_p8) target bundleno = 73 (0x49), region = 24  ;;  %s158_s18 = sld [smem:[#allocation3]] (!%p114_p8) }
  0x17   : > { %s292_s19 = sld [smem:[#allocation3 + $0x1]] (!%p114_p8)  ;;  %s294_s20 = sld [smem:[#allocation3 + $0x2]] (!%p114_p8) }
  0x18   : > { %s296_s21 = sld [smem:[#allocation3 + $0x3]] (!%p114_p8) }
  0x1b   : > { %v156_v2 = vstv (!%p114_p8), %s290_s17 }
  0x1c   : > { %v159_v3 = vstv (!%p114_p8), %s158_s18 }
  0x1d   : > { %s436_s14 = smov (!%p139_p9, %s359_s14), 1  ;;  %v165_v4 = vstv %s292_s19  ;;  %v171_v8 = vstv %s294_s20 }
  0x1e   : > { %s300_s22 = sshll.u32 %s436_s14, 3  ;;  %v177_v10 = vstv %s296_s21 }
  0x1f   : > { %s146_s25 = scalar_lea.vmem %s429_s1, %s300_s22  ;;  %s154_s28 = scalar_lea.vmem %s430_s2, %s300_s22 }
  0x20   : > { %v157_v0 = vld [vmem:[%s146_s25] sm:$0x3]  ;;  %v291_v1 = vld [vmem:[%s146_s25 + $0x2] sm:$0x3]  ;;  %v293_v5 = vld [vmem:[%s146_s25 + $0x4] sm:$0x3] }
  0x21   : > { %v160_v6 = vmul.f32 %v159_v3, %v157_v0  ;;  %v166_v7 = vmul.f32 %v291_v1, %v165_v4  ;;  %v295_v9 = vld [vmem:[%s146_s25 + $0x6] sm:$0x3]  ;;  %v172_v12 = vmul.f32 %v293_v5, %v171_v8  ;;  %v186_v20 = vld [vmem:[%s146_s25] sm:$0x3]  ;;  %v187_v21 = vld [vmem:[%s146_s25 + $0x2] sm:$0x3] }
  0x22   : > { %v178_v14 = vmul.f32 %v295_v9, %v177_v10  ;;  %v188_v22 = vld [vmem:[%s146_s25 + $0x4] sm:$0x3]  ;;  %v189_v23 = vld [vmem:[%s146_s25 + $0x6] sm:$0x3] }
  0x23   : > { %v161_v11 = vadd.f32 %v160_v6, %v156_v2 }
  0x25   : > { %v167_v13 = vadd.f32 %v166_v7, %v161_v11 }
  0x27   : > { %v173_v15 = vadd.f32 %v172_v12, %v167_v13 }
  0x29   : > { %v179_v16 = vadd.f32 %v178_v14, %v173_v15 }
  0x2b   : > { %v297_v17 = vmul.f32 -1.442695, %v179_v16 }
  0x2d   : > { %327 = vpow2.f32 %v297_v17 }
  0x37   : > { %v328_v18 = vpop.eup %327 }
  0x38   : > { %v183_v19 = vadd.f32 1.0, %v328_v18 }
  0x3a   : > { %329 = vrcp.f32 %v183_v19 }
  0x44   : > { %v330_v24 = vpop.eup %329 }
  0x45   : > { %v190_v25 = vmul.f32 %v330_v24, %v186_v20  ;;  %v191_v26 = vmul.f32 %v330_v24, %v187_v21  ;;  %v192_v27 = vmul.f32 %v330_v24, %v188_v22  ;;  %v193_v28 = vmul.f32 %v330_v24, %v189_v23 }
  0x47   : > { %194 = vst [vmem:[%s154_s28] sm:$0x3] %v190_v25  ;;  %195 = vst [vmem:[%s154_s28 + $0x2] sm:$0x3] %v191_v26 }
  0x48   : > { %196 = vst [vmem:[%s154_s28 + $0x4] sm:$0x3] %v192_v27  ;;  %197 = vst [vmem:[%s154_s28 + $0x6] sm:$0x3] %v193_v28 }
  0x49 PF: > { %s18_s16 = sadd.s32 1, %s367_s16   ;;  %s431_s14 = smov %s363_s15 }
  0x4a   : > { %p15_p10 = scmp.ge.s32.totalorder %s18_s16, 4   ;;  %s432_s15 = smov %s434_s0 }
  0x4c   :  { %17 = sbr.rel (!%p15_p10) target bundleno = 17 (0x11), region = 57 }

</bundles_post_ra>
